<compile_context>
chip_gen: v6e
topology: v6e:2x2x1
jax: 0.10.0
libtpu: 0.0.40
codegen_flags: <defaults>
</compile_context>

<pallas_src>
import functools

import jax
import jax.numpy as jnp
from jax.experimental import pallas as pl
from jax.experimental.pallas import tpu as pltpu

EPS = 1e-5
_MIB = 1024 * 1024
_TN_CANDIDATES = (1024, 512, 256, 128)
_TK_CANDIDATES = (512, 256, 128)


# ---------------------------------------------------------------------------
# Shared BatchNorm(training stats) + ReLU epilogue (on a VMEM-resident f32 tile)
# ---------------------------------------------------------------------------
def _bn_relu_epilogue(h, gamma, beta, true_batch):
    """h: (Bp, tn) f32 pre-BN activations; rows >= true_batch are exactly zero."""
    padded_batch = h.shape[0]
    pad = padded_batch - true_batch
    inv_n = jnp.float32(1.0 / true_batch)

    # Padded input rows are exactly zero, so they contribute nothing to the sum.
    mean = jnp.sum(h, axis=0, keepdims=True) * inv_n
    centered = h - mean
    # Centered (numerically stable) second moment; remove the padded rows'
    # (0 - mean)^2 contribution analytically instead of masking the whole tile.
    sq_sum = jnp.sum(centered * centered, axis=0, keepdims=True)
    var = (sq_sum - jnp.float32(pad) * mean * mean) * inv_n
    var = jnp.maximum(var, 0.0)

    # Folded affine: one mul + one add + one max over the (Bp, tn) tile.
    scale = gamma * jax.lax.rsqrt(var + EPS)
    out = jnp.maximum(centered * scale + beta, 0.0)
    if pad:
        # Keep padded rows exactly zero: load-bearing for the next layer's stats.
        rows = jax.lax.broadcasted_iota(jnp.int32, h.shape, 0)
        out = jnp.where(rows < true_batch, out, 0.0)
    return out


# ---------------------------------------------------------------------------
# Kernels
# ---------------------------------------------------------------------------
def _linear_bn_relu_resident_kernel(x_ref, w_ref, g_ref, be_ref, o_ref, *,
                                    true_batch):
    """Full-K-resident Linear(no bias) -> BatchNorm1d -> ReLU for one N tile."""
    h = jnp.dot(x_ref[...], w_ref[...], preferred_element_type=jnp.float32)
    o_ref[...] = _bn_relu_epilogue(h, g_ref[...], be_ref[...],
                                   true_batch).astype(o_ref.dtype)


def _linear_bn_relu_stream_kernel(x_ref, w_ref, g_ref, be_ref, o_ref, acc_ref, *,
                                  true_batch):
    """K-streaming Linear(no bias) -> BatchNorm1d -> ReLU (f32 VMEM accumulator)."""
    k = pl.program_id(1)
    partial_sum = jnp.dot(x_ref[...], w_ref[...],
                          preferred_element_type=jnp.float32)

    @pl.when(k == 0)
    def _():
        acc_ref[...] = partial_sum        # first K step writes directly (no zero-init)

    @pl.when(k > 0)
    def _():
        acc_ref[...] += partial_sum

    @pl.when(k == pl.num_programs(1) - 1)
    def _():
        o_ref[...] = _bn_relu_epilogue(acc_ref[...], g_ref[...], be_ref[...],
                                       true_batch).astype(o_ref.dtype)


def _linear_bias_resident_kernel(x_ref, w_ref, b_ref, o_ref):
    """Full-K-resident final Linear(bias=True) for one N tile."""
    h = jnp.dot(x_ref[...], w_ref[...], preferred_element_type=jnp.float32)
    o_ref[...] = (h + b_ref[...]).astype(o_ref.dtype)


def _linear_bias_stream_kernel(x_ref, w_ref, b_ref, o_ref, acc_ref):
    """K-streaming final Linear(bias=True)."""
    k = pl.program_id(1)
    partial_sum = jnp.dot(x_ref[...], w_ref[...],
                          preferred_element_type=jnp.float32)

    @pl.when(k == 0)
    def _():
        acc_ref[...] = partial_sum

    @pl.when(k > 0)
    def _():
        acc_ref[...] += partial_sum

    @pl.when(k == pl.num_programs(1) - 1)
    def _():
        o_ref[...] = (acc_ref[...] + b_ref[...]).astype(o_ref.dtype)


# ---------------------------------------------------------------------------
# Wrapper helpers
# ---------------------------------------------------------------------------
def _round_up(n, m):
    return -(-n // m) * m


def _pad_axis_to(a, target, axis):
    pad = target - a.shape[axis]
    if pad == 0:
        return a
    widths = [(0, 0)] * a.ndim
    widths[axis] = (0, pad)
    return jnp.pad(a, widths)


def _vmem_plan():
    """Generation-aware VMEM limit + planning budget (v7x: 64 MiB/TC; v5e/v6e: 128)."""
    try:
        cap = int(pltpu.get_tpu_info().vmem_capacity_bytes)
    except Exception:
        cap = 64 * _MIB                       # conservative: v7x per-TensorCore size
    limit = max(32 * _MIB, min(cap - 12 * _MIB, 100 * _MIB))
    budget = int(limit * 0.85)                # headroom for Mosaic temporaries
    return limit, budget


def _plan_tiles(Bp, Kp, Np, out_itemsize, budget):
    """Return (k_resident, tn, tk) for one linear layer."""

    def n_ok(tn):
        # >= 2 N tiles whenever the feature dim allows, so both v7x cores get work.
        return Np % tn == 0 and (Np // tn >= 2 or Np <= 128)

    # 1) K-resident: activations stay in VMEM, single dot per N tile, no scratch.
    for tn in _TN_CANDIDATES:
        if not n_ok(tn):
            continue
        need = (2 * Bp * Kp * 2                # resident bf16 activations (worst case 2 bufs)
                + 2 * Kp * tn * 2              # double-buffered bf16 weight tile
                + 2 * Bp * tn * out_itemsize   # double-buffered output tile
                + Bp * tn * 4)                 # f32 matmul result temporary
        if need <= budget:
            return True, tn, Kp

    # 2) K-streaming fallback: maximize tn (dominant HBM re-read term), modest tk.
    for tn in _TN_CANDIDATES:
        if not n_ok(tn):
            continue
        for tk in _TK_CANDIDATES:
            if Kp % tk != 0:
                continue
            need = (2 * Bp * tk * 2
                    + 2 * tk * tn * 2
                    + 2 * Bp * tn * out_itemsize
                    + Bp * tn * 4)             # persistent f32 accumulator
            if need <= budget:
                return False, tn, tk

    return False, 128, 128                     # last resort: minimum legal tiles


def _linear_layer(x, w, extras, kernels, out_dtype, vmem_limit, budget,
                  transcendentals_per_col=0):
    """One Linear layer (optionally fused BN+ReLU epilogue) as a single pallas_call."""
    Bp, Kp = x.shape
    _, Np = w.shape
    out_itemsize = jnp.dtype(out_dtype).itemsize
    resident_kernel, stream_kernel = kernels

    k_resident, tn, tk = _plan_tiles(Bp, Kp, Np, out_itemsize, budget)
    n_tiles = Np // tn

    if k_resident:
        grid = (n_tiles,)
        in_specs = ([pl.BlockSpec((Bp, Kp), lambda j: (0, 0)),        # fetched once
                     pl.BlockSpec((Kp, tn), lambda j: (0, j))]
                    + [pl.BlockSpec((1, tn), lambda j: (0, j)) for _ in extras])
        out_specs = pl.BlockSpec((Bp, tn), lambda j: (0, j))
        scratch_shapes = []
        dims = ("parallel",)
        kernel = resident_kernel
        x_hbm_reads = 1
    else:
        grid = (n_tiles, Kp // tk)
        in_specs = ([pl.BlockSpec((Bp, tk), lambda j, k: (0, k)),
                     pl.BlockSpec((tk, tn), lambda j, k: (k, j))]
                    + [pl.BlockSpec((1, tn), lambda j, k: (0, j)) for _ in extras])
        out_specs = pl.BlockSpec((Bp, tn), lambda j, k: (0, j))
        scratch_shapes = [pltpu.VMEM((Bp, tn), jnp.float32)]
        dims = ("parallel", "arbitrary")
        kernel = stream_kernel
        x_hbm_reads = n_tiles                  # activations re-streamed per N tile

    cost = pl.CostEstimate(
        flops=2 * Bp * Kp * Np,
        transcendentals=transcendentals_per_col * Np,
        bytes_accessed=(x.size * x.dtype.itemsize * x_hbm_reads
                        + w.size * w.dtype.itemsize
                        + sum(e.size * e.dtype.itemsize for e in extras)
                        + Bp * Np * out_itemsize),
    )

    return pl.pallas_call(
        kernel,
        out_shape=jax.ShapeDtypeStruct((Bp, Np), out_dtype),
        grid_spec=pltpu.PrefetchScalarGridSpec(
            num_scalar_prefetch=0,
            grid=grid,
            in_specs=in_specs,
            out_specs=out_specs,
            scratch_shapes=scratch_shapes,
        ),
        compiler_params=pltpu.CompilerParams(
            dimension_semantics=dims,
            vmem_limit_bytes=vmem_limit,
        ),
        cost_estimate=cost,
    )(x, w, *extras)


def expander_forward(x, params):
    """Forward pass of Expander(input_dim, hidden_dim, output_dim, num_layers=3)."""
    w1, g1, be1, w2, g2, be2, w3, b3 = params
    B, d_in = x.shape
    d_out = w3.shape[1]
    out_dtype = x.dtype

    vmem_limit, budget = _vmem_plan()

    # Pad batch to >= 128 rows (MXU fill) and feature dims to lane multiples of 128.
    Bp = max(128, _round_up(B, 16))
    xp = _pad_axis_to(_pad_axis_to(x, Bp, 0),
                      _round_up(d_in, 128), 1).astype(jnp.bfloat16)

    def prep_w(w):   # weights stored as (D_in, D_out); pad both dims, cast to bf16.
        return _pad_axis_to(_pad_axis_to(w, _round_up(w.shape[0], 128), 0),
                            _round_up(w.shape[1], 128), 1).astype(jnp.bfloat16)

    def prep_v(v):   # gamma / beta / bias: (1, D) f32, lane-padded.
        return _pad_axis_to(v, _round_up(v.shape[1], 128), 1).astype(jnp.float32)

    w1p, w2p, w3p = prep_w(w1), prep_w(w2), prep_w(w3)
    g1p, be1p, g2p, be2p, b3p = map(prep_v, (g1, be1, g2, be2, b3))

    bn_kernels = (functools.partial(_linear_bn_relu_resident_kernel, true_batch=B),
                  functools.partial(_linear_bn_relu_stream_kernel, true_batch=B))
    bias_kernels = (_linear_bias_resident_kernel, _linear_bias_stream_kernel)

    # Layers 1 & 2: Linear(no bias) -> BatchNorm(batch stats) -> ReLU, bf16 output.
    h = _linear_layer(xp, w1p, (g1p, be1p), bn_kernels, jnp.bfloat16,
                      vmem_limit, budget, transcendentals_per_col=1)
    h = _linear_layer(h, w2p, (g2p, be2p), bn_kernels, jnp.bfloat16,
                      vmem_limit, budget, transcendentals_per_col=1)
    # Layer 3: Linear with bias, output in the caller's dtype.
    out = _linear_layer(h, w3p, (b3p,), bias_kernels, out_dtype,
                        vmem_limit, budget)

    return out[:B, :d_out]


# ---------------------------------------------------------------------------
# Params + pure-JAX reference
# ---------------------------------------------------------------------------
def init_params(key, input_dim, hidden_dim, output_dim):
    k1, k2, k3, k4 = jax.random.split(key, 4)
    # Linear weights stored already transposed: (D_in, D_out).
    w1 = jax.random.normal(k1, (input_dim, hidden_dim), jnp.float32) * 0.02
    w2 = jax.random.normal(k2, (hidden_dim, hidden_dim), jnp.float32) * 0.02
    w3 = jax.random.normal(k3, (hidden_dim, output_dim), jnp.float32) * 0.02
    b3 = jax.random.normal(k4, (1, output_dim), jnp.float32) * 0.02
    g1 = jnp.ones((1, hidden_dim), jnp.float32)
    be1 = jnp.zeros((1, hidden_dim), jnp.float32)
    g2 = jnp.ones((1, hidden_dim), jnp.float32)
    be2 = jnp.zeros((1, hidden_dim), jnp.float32)
    return (w1, g1, be1, w2, g2, be2, w3, b3)


def reference_forward(x, params):
    """Plain-JAX reference with the same bf16-matmul / f32-epilogue recipe."""
    w1, g1, be1, w2, g2, be2, w3, b3 = params

    def mm(a, w):
        return jnp.dot(a.astype(jnp.bfloat16), w.astype(jnp.bfloat16),
                       preferred_element_type=jnp.float32)

    def bn_relu(h, g, b):
        m = h.mean(axis=0, keepdims=True)
        v = ((h - m) ** 2).mean(axis=0, keepdims=True)
        return jnp.maximum((h - m) * jax.lax.rsqrt(v + EPS) * g + b, 0.0)

    h = bn_relu(mm(x, w1), g1, be1)
    h = bn_relu(mm(h, w2), g2, be2)
    return mm(h, w3) + b3


if __name__ == "__main__":
    # Small, deliberately awkward shapes to exercise batch and feature padding.
    B, input_dim, hidden_dim, output_dim = 12, 96, 256, 192
    key = jax.random.PRNGKey(0)
    kx, kp = jax.random.split(key)
    x = jax.random.normal(kx, (B, input_dim), jnp.float32)
    params = init_params(kp, input_dim, hidden_dim, output_dim)

    out = expander_forward(x, params)
    out = jax.block_until_ready(out)

    ref = reference_forward(x, params)
    assert out.shape == (B, output_dim), out.shape
    assert jnp.allclose(out, ref, atol=5e-3, rtol=5e-3), "mismatch vs reference"
    print("KERNEL_OK")
</pallas_src>

<mosaic_0001>
module attributes {stable_mosaic.version = 11 : i64} {
  func.func @_linear_bn_relu_resident_kernel(%arg0: i32, %arg1: memref<128x128xbf16, #tpu.memory_space<vmem>>, %arg2: memref<128x128xbf16, #tpu.memory_space<vmem>>, %arg3: memref<1x128xf32, #tpu.memory_space<vmem>>, %arg4: memref<1x128xf32, #tpu.memory_space<vmem>>, %arg5: memref<128x128xbf16, #tpu.memory_space<vmem>>) attributes {dimension_semantics = [#tpu.dimension_semantics<parallel>], iteration_bounds = array<i64: 2>, scalar_prefetch = 0 : i64, scratch_operands = 0 : i64, tpu.core_type = #tpu.core_type<tc>, window_params = [{pipeline_mode = #tpu.pipeline_mode<synchronous>, transform_indices = @transform_0, window_bounds = array<i64: 128, 128>}, {transform_indices = @transform_1, window_bounds = array<i64: 128, 128>}, {transform_indices = @transform_2, window_bounds = array<i64: 1, 128>}, {transform_indices = @transform_3, window_bounds = array<i64: 1, 128>}, {transform_indices = @transform_4, window_bounds = array<i64: 128, 128>}]} {
    %c0 = arith.constant 0 : index
    %c0_0 = arith.constant 0 : index
    %0 = vector.load %arg1[%c0, %c0_0] : memref<128x128xbf16, #tpu.memory_space<vmem>>, vector<128x128xbf16>
    %c0_1 = arith.constant 0 : index
    %c0_2 = arith.constant 0 : index
    %1 = vector.load %arg2[%c0_1, %c0_2] : memref<128x128xbf16, #tpu.memory_space<vmem>>, vector<128x128xbf16>
    %cst = arith.constant dense<0.000000e+00> : vector<128x128xf32>
    %2 = tpu.matmul %0, %1, %cst {dimension_numbers = #tpu.dot_dimension_numbers<[1], [0], [0], [1], [0, 0, 1, 1], [], []>} : vector<128x128xbf16>, vector<128x128xbf16>, vector<128x128xf32> -> vector<128x128xf32>
    %c0_3 = arith.constant 0 : index
    %c0_4 = arith.constant 0 : index
    %3 = vector.load %arg3[%c0_3, %c0_4] : memref<1x128xf32, #tpu.memory_space<vmem>>, vector<1x128xf32>
    %c0_5 = arith.constant 0 : index
    %c0_6 = arith.constant 0 : index
    %4 = vector.load %arg4[%c0_5, %c0_6] : memref<1x128xf32, #tpu.memory_space<vmem>>, vector<1x128xf32>
    %cst_7 = arith.constant dense<0.000000e+00> : vector<128xf32>
    %5 = vector.multi_reduction <add>, %2, %cst_7 [0] : vector<128x128xf32> to vector<128xf32>
    %6 = vector.shape_cast %5 : vector<128xf32> to vector<1x128xf32>
    %cst_8 = arith.constant 0.0833333358 : f32
    %7 = vector.broadcast %cst_8 : f32 to vector<1x128xf32>
    %8 = arith.mulf %6, %7 : vector<1x128xf32>
    %9 = vector.broadcast %8 : vector<1x128xf32> to vector<128x128xf32>
    %10 = arith.subf %2, %9 : vector<128x128xf32>
    %11 = arith.mulf %10, %10 : vector<128x128xf32>
    %cst_9 = arith.constant dense<0.000000e+00> : vector<128xf32>
    %12 = vector.multi_reduction <add>, %11, %cst_9 [0] : vector<128x128xf32> to vector<128xf32>
    %13 = vector.shape_cast %12 : vector<128xf32> to vector<1x128xf32>
    %cst_10 = arith.constant 1.160000e+02 : f32
    %14 = vector.broadcast %cst_10 : f32 to vector<1x128xf32>
    %15 = arith.mulf %14, %8 : vector<1x128xf32>
    %16 = arith.mulf %15, %8 : vector<1x128xf32>
    %17 = arith.subf %13, %16 : vector<1x128xf32>
    %cst_11 = arith.constant 0.0833333358 : f32
    %18 = vector.broadcast %cst_11 : f32 to vector<1x128xf32>
    %19 = arith.mulf %17, %18 : vector<1x128xf32>
    %cst_12 = arith.constant 0.000000e+00 : f32
    %20 = vector.broadcast %cst_12 : f32 to vector<1x128xf32>
    %21 = arith.maximumf %19, %20 : vector<1x128xf32>
    %cst_13 = arith.constant 9.99999974E-6 : f32
    %22 = vector.broadcast %cst_13 : f32 to vector<1x128xf32>
    %23 = arith.addf %21, %22 : vector<1x128xf32>
    %24 = math.rsqrt %23 : vector<1x128xf32>
    %25 = arith.mulf %3, %24 : vector<1x128xf32>
    %26 = vector.broadcast %25 : vector<1x128xf32> to vector<128x128xf32>
    %27 = arith.mulf %10, %26 : vector<128x128xf32>
    %28 = vector.broadcast %4 : vector<1x128xf32> to vector<128x128xf32>
    %29 = arith.addf %27, %28 : vector<128x128xf32>
    %cst_14 = arith.constant 0.000000e+00 : f32
    %30 = vector.broadcast %cst_14 : f32 to vector<128x128xf32>
    %31 = arith.maximumf %29, %30 : vector<128x128xf32>
    %32 = tpu.iota {dimensions = array<i32: 0>} : vector<128x128xi32>
    %c12_i32 = arith.constant 12 : i32
    %33 = vector.broadcast %c12_i32 : i32 to vector<128x128xi32>
    %34 = arith.cmpi slt, %32, %33 : vector<128x128xi32>
    %cst_15 = arith.constant 0.000000e+00 : f32
    %35 = vector.broadcast %cst_15 : f32 to vector<128x128xf32>
    %36 = arith.select %34, %31, %35 : vector<128x128xi1>, vector<128x128xf32>
    %37 = arith.truncf %36 : vector<128x128xf32> to vector<128x128xbf16>
    %c0_16 = arith.constant 0 : index
    %c0_17 = arith.constant 0 : index
    %38 = vector.load %arg5[%c0_16, %c0_17] : memref<128x128xbf16, #tpu.memory_space<vmem>>, vector<128x128xbf16>
    tpu.vector_store %arg5[%c0_16, %c0_17], %37 {strides = array<i32>} : memref<128x128xbf16, #tpu.memory_space<vmem>>, vector<128x128xbf16>,
    return
  }
  func.func @transform_0(%arg0: i32) -> (i32, i32) {
    %c0_i32 = arith.constant 0 : i32
    %c0_i32_0 = arith.constant 0 : i32
    %c0_i32_1 = arith.constant 0 : i32
    return %c0_i32, %c0_i32_0 : i32, i32
  }
  func.func @transform_1(%arg0: i32) -> (i32, i32) {
    %c0_i32 = arith.constant 0 : i32
    %c0_i32_0 = arith.constant 0 : i32
    return %c0_i32, %arg0 : i32, i32
  }
  func.func @transform_2(%arg0: i32) -> (i32, i32) {
    %c0_i32 = arith.constant 0 : i32
    %c0_i32_0 = arith.constant 0 : i32
    return %c0_i32, %arg0 : i32, i32
  }
  func.func @transform_3(%arg0: i32) -> (i32, i32) {
    %c0_i32 = arith.constant 0 : i32
    %c0_i32_0 = arith.constant 0 : i32
    return %c0_i32, %arg0 : i32, i32
  }
  func.func @transform_4(%arg0: i32) -> (i32, i32) {
    %c0_i32 = arith.constant 0 : i32
    %c0_i32_0 = arith.constant 0 : i32
    return %c0_i32, %arg0 : i32, i32
  }
}

</mosaic_0001>

<bundles_post_ra>
// kernel: tpu_custom_call.1
= control target key start
LH: loop header
LB: loop body
LE: loop exit
PB: predicated region body
PF: predicated region fallthrough
CT: control target
= control target key end

     0   :  { %9 = vsyncpa [#allocation3], 0  ;;  %s1483_s0 = inlined_call_operand.hbm [shape: bf16[128,128], index: 0, kind: input, shape index: {}]   ;;  %s1484_s1 = inlined_call_operand.hbm [shape: bf16[128,256], index: 1, kind: input, shape index: {}]   ;;  %s1485_s2 = inlined_call_operand.vmem [shape: f32[1,256], index: 2, kind: input, shape index: {}]   ;;  %s1486_s3 = inlined_call_operand.vmem [shape: f32[1,256], index: 3, kind: input, shape index: {}]   ;;  %s1487_s4 = inlined_call_operand.hbm [shape: bf16[128,256], index: 4, kind: output, shape index: {}]  }
   0x1   :  { %10 = vsyncpa [#allocation6], 0 }
   0x2   :  { %12 = vsyncpa [#allocation6 + $0x1], 0 }
   0x3   :  { %13 = vsyncpa [#allocation4], 0 }
   0x4   :  { %15 = vsyncpa [#allocation4 + $0x1], 0  ;;  %s1233_s15 = smov 0   ;;  %s1235_s16 = smov 0  }
   0x5   :  { %s1237_s17 = smov 0   ;;  %s1239_s18 = smov 0  }
   0x6 LB: > { %s1254_s19 = sadd.s32 4294967295, %s1196_s18   ;;  %s874_s20 = sadd.s32 4294967294, %s1196_s18   ;;  %s1196_s18 = sphi %s1239_s18, %s1509_s18   ;;  %s1192_s17 = sphi %s1237_s17, %s1508_s17   ;;  %s1188_s16 = sphi %s1235_s16, %s1507_s16   ;;  %s1184_s15 = sphi %s1233_s15, %s1506_s15  }
   0x7   : > { %s1258_s21 = sadd.s32 1, %s1196_s18   ;;  %s49_s22 = sadd.s32 1, %s1192_s17 }
   0x8   : > { %s46_s23 = ssub.s32 %s1196_s18, %s1258_s21  ;;  %p56_p0 = scmp.ne.s32.totalorder %s1192_s17, %s1188_s16 }
   0x9   : > { %p47_p1 = scmp.eq.s32.totalorder %s46_s23, 0  ;;  %p57_p2 = scmp.eq.s32.totalorder %s1196_s18, 0 }
   0xa   : > { %p62_p3 = scmp.ne.s32.totalorder %s1188_s16, %s1184_s15  ;;  %p1491_p4 = scmp.eq.s32.totalorder %s1254_s19, 0 }
   0xb   : > { %s1270_s24 = scalar_select %p47_p1, %s1192_s17, %s49_s22  }
   0xc   : > { %p1272_p5 = por %p57_p2, %p56_p0  ;;  %p1278_p6 = por %p1491_p4, %p62_p3 }
   0xd   : > { %p138_p7 = scmp.eq.s32.totalorder %s1254_s19, 1  ;;  %p144_p8 = scmp.eq.s32.totalorder %s874_s20, 1 }
   0xe   : > { %s1493_s26 = scalar_select %p1278_p6, 1, 0 }
   0xf   : > { %p875_p9 = scmp.ge.s32.totalorder %s1196_s18, 1  ;;  %p151_p10 = scmp.lt.s32.totalorder %s1196_s18, 3 }
  0x10   : > { %p1285_p11 = por %p138_p7, %p56_p0  ;;  %p1289_p12 = por %p144_p8, %p62_p3 }
  0x11   : > { %p1293_p13 = pnand %p875_p9, %p151_p10  ;;  %s1198_s30 = smov [#allocation2]  }
  0x12   : > { %s1494_s27 = scalar_select %p1285_p11, 1, 0 }
  0x13   : > { %s1495_s28 = scalar_select %p1289_p12, 1, 0 }
  0x14   : > { %s1496_s29 = scalar_select %p1293_p13, 1, 0 }
  0x15   : > { %p1000_p1 = pneg %p1293_p13  ;;  %s163_s5 = sshll.u32 %s1198_s30, 4  ;;  %s164_s5 = int_to_ptr.vmem [resolvable:$true] %s163_s5 }
  0x16   : > { %p1013_p3 = scmp.lt.s32.totalorder %s1196_s18, 2  ;;  %s177_s7 = sand.u32 1, %s1192_s17  }
  0x17   : > { %p1301_p2 = pnand %p1000_p1, %p1491_p4  ;;  %s1085_s8 = scalar_lea.vmem %s164_s5, 1024 }
  0x18   : > { %p1086_p8 = scmp.ne.s32.totalorder %s164_s5, %s1085_s8  ;;  %p1093_p12 = scmp.lt.s32.totalorder %s164_s5, %s164_s5 }
  0x19   : > { %p1076_p7 = pneg %p1301_p2  ;;  %p1094_p11 = scmp.lt.s32.totalorder %s1085_s8, %s1085_s8 }
  0x1b   : > { %p1088_p9 = pnand %p1086_p8, %p1076_p7  ;;  %p1095_p6 = por %p1094_p11, %p1093_p12 }
  0x1d   : > { %p1089_p10 = pneg %p1088_p9 }
  0x1f   : > { %p1096_p13 = pnand %p1095_p6, %p1089_p10 }
  0x21   : > { %1099 = shalt.err (!%p1096_p13)
}
  0x22   : > { %s1199_s9 = smov 64   ;;  %s1200_s10 = smov 4  }
  0x23   : > { %1003 = dma.hbm_to_vmem [thread:$0]  (!%p1301_p2), %s1483_s0, 1024, %s164_s5, [#allocation3], %s1199_s9, %s1199_s9, %s1200_s10  }
  0x24   : > { %p1322_p1 = pnand %p1013_p3, %p1272_p5  ;;  %s878_s14 = sshll.u32 %s177_s7, 6 }
  0x25   : > { %s879_s20 = sshll.u32 %s1196_s18, 6  ;;  %s181_s6 = scalar_lea.vmem [#allocation5], %s878_s14 }
  0x26   : > { %s1330_s30 = scalar_lea.hbm %s1484_s1, %s879_s20  ;;  %s187_s8 = sshll.u32 %s181_s6, 4  ;;  %s1332_s8 = int_to_ptr.vmem [resolvable:$true] %s187_s8 }
  0x27   : > { %s1334_s25 = scalar_lea.sflag [#allocation6], %s177_s7  ;;  %s1100_s5 = scalar_lea.hbm %s1330_s30, 1024 }
  0x28   : > { %p1101_p5 = scmp.ne.s32.totalorder %s1330_s30, %s1100_s5  ;;  %p1102_p6 = pneg %p1322_p1 }
  0x29   : > { %s1105_s20 = scalar_lea.hbm %s1484_s1, 2048  ;;  %p1106_p13 = scmp.lt.s32.totalorder %s1330_s30, %s1484_s1 }
  0x2a   : > { %p1103_p11 = pnand %p1102_p6, %p1101_p5  ;;  %p1107_p2 = scmp.lt.s32.totalorder %s1105_s20, %s1100_s5 }
  0x2c   : > { %p1104_p12 = pneg %p1103_p11  ;;  %p1108_p3 = por %p1107_p2, %p1106_p13 }
  0x2e   : > { %p1109_p7 = pnand %p1108_p3, %p1104_p12 }
  0x30   : > { %1112 = shalt.err (!%p1109_p7)
}
  0x31   : > { %s1113_s7 = scalar_lea.vmem %s1332_s8, 1024  ;;  %s1201_s14 = smov [#allocation5]  }
  0x32   : > { %p1114_p8 = scmp.ne.s32.totalorder %s1332_s8, %s1113_s7  ;;  %s1118_s6 = sshll.u32 %s1201_s14, 4  ;;  %s1119_s6 = int_to_ptr.vmem [resolvable:$false] %s1118_s6 }
  0x33   : > { %s1120_s11 = scalar_lea.vmem %s1119_s6, 2048  ;;  %p1121_p5 = scmp.lt.s32.totalorder %s1332_s8, %s1119_s6 }
  0x34   : > { %p1116_p9 = pnand %p1114_p8, %p1102_p6  ;;  %p1122_p11 = scmp.lt.s32.totalorder %s1120_s11, %s1113_s7 }
  0x36   : > { %p1117_p10 = pneg %p1116_p9  ;;  %p1123_p0 = por %p1122_p11, %p1121_p5 }
  0x38   : > { %p1124_p4 = pnand %p1123_p0, %p1117_p10 }
  0x3a   : > { %1127 = shalt.err (!%p1124_p4)
}
  0x3b   : > { %s1202_s5 = smov 128   ;;  %p1499_p6 = scmp.ne.s32.totalorder %s1496_s29, 0 }
  0x3c   : > { %1007 = dma.hbm_to_vmem [thread:$0]  (!%p1322_p1), %s1330_s30, 1024, %s1332_s8, %s1334_s25, %s1202_s5, %s1199_s9, %s1200_s10  }
  0x3d   : > { %211 = sbr.rel (%p1499_p6) target bundleno = 443 (0x1bb), region = 36  ;;  %p1500_p12 = scmp.eq.s32.totalorder (!%p1499_p6), %s1254_s19, 0 }
  0x42   : > { %1171 = dma.done.wait (%p1500_p12), [#allocation3], 1024   ;;  %p1501_p13 = pmov %p1500_p12 }
  0x43   : > { %s1364_s12 = sand.u32 1, %s1188_s16   ;;  %p1502_p4 = scmp.ne.s32.totalorder %s1493_s26, 0 }
  0x44   : > { %1173 = vsyncadd (%p1501_p13), [#allocation3], 4294966272  ;;  %s882_s13 = sshll.u32 %s1364_s12, 6  ;;  %s218_s20 = scalar_lea.sflag [#allocation6], %s1364_s12 }
  0x45   : > { %s1370_s9 = scalar_lea.vmem [#allocation5], %s882_s13 }
  0x46   : > { %1175 = dma.done.wait (%p1502_p4), %s218_s20, 1024  }
  0x47   : > { %1177 = vsyncadd (%p1502_p4), %s218_s20, 4294966272  ;;  %v1056_v0 = vld [vmem:[%s1370_s9 + $0x38] sm:$0xff]   ;;  %v1057_v1 = vld [vmem:[%s1370_s9 + $0x30] sm:$0xff]   ;;  %v1203_v25 = vmov 0.0|0.0   ;;  %s1392_s26 = scalar_lea.vmem [#allocation7], %s882_s13  ;;  %p252_p0 = scmp.lt.s32.totalorder %s1254_s19, 1 }
  0x48   : > { %944 = vmatprep.subr.bf16.mxu0 %v1056_v0  ;;  %976 = vmatprep.subr.bf16.mxu1 %v1056_v0  ;;  %v1058_v2 = vld [vmem:[%s1370_s9 + $0x28] sm:$0xff]   ;;  %v1059_v3 = vld [vmem:[%s1370_s9 + $0x20] sm:$0xff]   ;;  %v1060_v5 = vld [vmem:[%s1370_s9 + $0x18] sm:$0xff]   ;;  %v903_v26 = vcombine.low %v1203_v25, %v1203_v25  ;;  %v904_v27 = vcombine.high %v1203_v25, %v1203_v25  ;;  %s918_s7 = sshll.u32 %s1254_s19, 6  ;;  %s771_s14 = sshll.u32 %s1392_s26, 4  ;;  %s1439_s14 = int_to_ptr.vmem [resolvable:$true] %s771_s14 }
  0x49   : > { %945 = vmatpush3.bf16.msra.mxu0 %v1056_v0  ;;  %984 = vmatpush3.bf16.msra.mxu1 %v1056_v0  ;;  %v1064_v4 = vld [vmem:[#allocation2] sm:$0xff]   ;;  %v1061_v7 = vld [vmem:[%s1370_s9 + $0x10] sm:$0xff]   ;;  %v1062_v8 = vld [vmem:[%s1370_s9 + $0x8] sm:$0xff]   ;;  %s253_s29 = scalar_select %p252_p0, %s1254_s19, 1 }
  0x4a   : > { %946 = vmatprep.subr.bf16.mxu0 %v1057_v1  ;;  %977 = vmatprep.subr.bf16.mxu1 %v1057_v1  ;;  %v1068_v6 = vld [vmem:[#allocation2 + $0x20] sm:$0xff]   ;;  %v1065_v10 = vld [vmem:[#allocation2 + $0x8] sm:$0xff]   ;;  %v1066_v12 = vld [vmem:[#allocation2 + $0x10] sm:$0xff]   ;;  %744 = vst [vmem:[%s1392_s26 + $0x8] sm:$0xf] %v903_v26  ;;  %s1437_s5 = scalar_lea.hbm %s1487_s4, %s918_s7  ;;  %s759_s13 = scalar_lea.sflag [#allocation4], %s1364_s12 }
  0x4b   : > { %960 = vmatprep.mubr.bf16.mxu0 %v1064_v4  ;;  %968 = vmatprep.mubr.bf16.mxu1 %v1068_v6  ;;  %v1063_v9 = vld [vmem:[%s1370_s9] sm:$0xff]   ;;  %v1069_v11 = vld [vmem:[#allocation2 + $0x28] sm:$0xff]   ;;  %v1070_v13 = vld [vmem:[#allocation2 + $0x30] sm:$0xff]   ;;  %745 = vst [vmem:[%s1392_s26 + $0xc] sm:$0xf] %v904_v27  ;;  %s254_s8 = scalar_lea.vmem %s1485_s2, %s253_s29  ;;  %s257_s23 = scalar_lea.vmem %s1486_s3, %s253_s29 }
  0x4c   : > { %v1067_v14 = vld [vmem:[#allocation2 + $0x18] sm:$0xff]   ;;  %746 = vst [vmem:[%s1392_s26 + $0x10] sm:$0xf] %v903_v26  ;;  %747 = vst [vmem:[%s1392_s26 + $0x14] sm:$0xf] %v904_v27  ;;  %s1128_s20 = scalar_lea.vmem %s1439_s14, 1024 }
  0x4d   : > { %947 = vmatpush3.bf16.msra.mxu0 %v1057_v1  ;;  %985 = vmatpush3.bf16.msra.mxu1 %v1057_v1  ;;  %v1071_v15 = vld [vmem:[#allocation2 + $0x38] sm:$0xff]   ;;  %748 = vst [vmem:[%s1392_s26 + $0x18] sm:$0xf] %v903_v26  ;;  %749 = vst [vmem:[%s1392_s26 + $0x1c] sm:$0xf] %v904_v27  ;;  %p1129_p1 = scmp.ne.s32.totalorder %s1439_s14, %s1128_s20  ;;  %p1503_p2 = scmp.ne.s32.totalorder %s1494_s27, 0 }
  0x4e   : > { %948 = vmatprep.subr.bf16.mxu0 %v1058_v2  ;;  %978 = vmatprep.subr.bf16.mxu1 %v1058_v2  ;;  %750 = vst [vmem:[%s1392_s26 + $0x20] sm:$0xf] %v903_v26  ;;  %751 = vst [vmem:[%s1392_s26 + $0x24] sm:$0xf] %v904_v27  ;;  %s1204_s19 = smov [#allocation7]  }
  0x4f   : > { %752 = vst [vmem:[%s1392_s26 + $0x28] sm:$0xf] %v903_v26  ;;  %753 = vst [vmem:[%s1392_s26 + $0x2c] sm:$0xf] %v904_v27  ;;  %p1130_p3 = pnand %p1129_p1, %p1503_p2  ;;  %s1132_s9 = sshll.u32 %s1204_s19, 4  ;;  %s1133_s9 = int_to_ptr.vmem [resolvable:$false] %s1132_s9 }
  0x50   : > { %754 = vst [vmem:[%s1392_s26 + $0x30] sm:$0xf] %v903_v26  ;;  %755 = vst [vmem:[%s1392_s26 + $0x34] sm:$0xf] %v904_v27  ;;  %s1134_s29 = scalar_lea.vmem %s1133_s9, 2048  ;;  %p1135_p8 = scmp.lt.s32.totalorder %s1439_s14, %s1133_s9 }
  0x51   : > { %949 = vmatpush3.bf16.msra.mxu0 %v1058_v2  ;;  %986 = vmatpush3.bf16.msra.mxu1 %v1058_v2  ;;  %756 = vst [vmem:[%s1392_s26 + $0x38] sm:$0xf] %v903_v26  ;;  %757 = vst [vmem:[%s1392_s26 + $0x3c] sm:$0xf] %v904_v27  ;;  %p1131_p7 = pneg %p1130_p3  ;;  %p1136_p9 = scmp.lt.s32.totalorder %s1134_s29, %s1128_s20 }
  0x52   : > { %950 = vmatprep.subr.bf16.mxu0 %v1059_v3  ;;  %979 = vmatprep.subr.bf16.mxu1 %v1059_v3 }
  0x53   : > { %p1137_p10 = por %p1136_p9, %p1135_p8 }
  0x55   : > { %951 = vmatpush3.bf16.msra.mxu0 %v1059_v3  ;;  %987 = vmatpush3.bf16.msra.mxu1 %v1059_v3  ;;  %p1138_p5 = pnand %p1137_p10, %p1131_p7 }
  0x56   : > { %952 = vmatprep.subr.bf16.mxu0 %v1060_v5  ;;  %980 = vmatprep.subr.bf16.mxu1 %v1060_v5 }
  0x59   : > { %953 = vmatpush3.bf16.msra.mxu0 %v1060_v5  ;;  %988 = vmatpush3.bf16.msra.mxu1 %v1060_v5 }
  0x5a   : > { %954 = vmatprep.subr.bf16.mxu0 %v1061_v7  ;;  %981 = vmatprep.subr.bf16.mxu1 %v1061_v7 }
  0x5d   : > { %955 = vmatpush3.bf16.msra.mxu0 %v1061_v7  ;;  %989 = vmatpush3.bf16.msra.mxu1 %v1061_v7 }
  0x5e   : > { %956 = vmatprep.subr.bf16.mxu0 %v1062_v8  ;;  %982 = vmatprep.subr.bf16.mxu1 %v1062_v8 }
  0x61   : > { %957 = vmatpush3.bf16.msra.mxu0 %v1062_v8  ;;  %990 = vmatpush3.bf16.msra.mxu1 %v1062_v8 }
  0x62   : > { %958 = vmatprep.subr.bf16.mxu0 %v1063_v9  ;;  %983 = vmatprep.subr.bf16.mxu1 %v1063_v9 }
  0x65   : > { %959 = vmatpush3.bf16.msra.mxu0 %v1063_v9  ;;  %991 = vmatpush3.bf16.msra.mxu1 %v1063_v9 }
  0x68   : > { %961 = vmatmul.mubr.bf16.vlgmr.msra.gmra.mxu0 %v1065_v10  ;;  %969 = vmatmul.mubr.bf16.vlgmr.msra.gmra.mxu1 %v1069_v11 }
  0x69   : > { %964 = vmatprep.mubr.bf16.mxu0 %v1066_v12  ;;  %972 = vmatprep.mubr.bf16.mxu1 %v1070_v13 }
  0x70   : > { %965 = vmatmul.mubr.bf16.gmra.mxu0 %v1067_v14  ;;  %973 = vmatmul.mubr.bf16.gmra.mxu1 %v1071_v15 }
 0x128   : > { %v962_v16 = vpop.f32.mrf.mxu0  ;;  %v1384_v18 = vpop.f32.mrf.mxu1 }
 0x12a   : > { %v421_v17 = vpop.f32.mrf.mxu0  ;;  %v1386_v21 = vpop.f32.mrf.mxu1 }
 0x12c   : > { %v963_v19 = vpop.f32.mrf.mxu0  ;;  %v1388_v29 = vpop.f32.mrf.mxu1 }
 0x12e   : > { %v424_v20 = vpop.f32.mrf.mxu0  ;;  %v456_v34 = vpop.f32.mrf.mxu1 }
 0x12f   : > { %v486_v22 = vadd.f32 %v424_v20, %v421_v17 }
 0x130   : > { %v966_v23 = vpop.f32.mrf.mxu0  ;;  %v974_v37 = vpop.f32.mrf.mxu1 }
 0x131   : > { %v487_v24 = vadd.f32 %v962_v16, %v486_v22 }
 0x132   : > { %v437_v28 = vpop.f32.mrf.mxu0  ;;  %v469_v40 = vpop.f32.mrf.mxu1 }
 0x133   : > { %v488_v30 = vadd.f32 %v963_v19, %v487_v24 }
 0x134   : > { %v967_v31 = vpop.f32.mrf.mxu0  ;;  %v975_v43 = vpop.f32.mrf.mxu1 }
 0x135   : > { %v489_v32 = vadd.f32 %v488_v30, %v437_v28 }
 0x136   : > { %v440_v33 = vpop.f32.mrf.mxu0  ;;  %v472_v46 = vpop.f32.mrf.mxu1 }
 0x137   : > { %v490_v35 = vadd.f32 %v489_v32, %v440_v33 }
 0x139   : > { %v491_v36 = vadd.f32 %v966_v23, %v490_v35 }
 0x13b   : > { %v492_v38 = vadd.f32 %v967_v31, %v491_v36 }
 0x13d   : > { %v493_v39 = vadd.f32 %v492_v38, %v1386_v21 }
 0x13f   : > { %v494_v41 = vadd.f32 %v493_v39, %v456_v34 }
 0x141   : > { %v495_v42 = vadd.f32 %v1384_v18, %v494_v41 }
 0x143   : > { %v496_v44 = vadd.f32 %v1388_v29, %v495_v42 }
 0x145   : > { %v497_v45 = vadd.f32 %v496_v44, %v469_v40 }
 0x147   : > { %v498_v47 = vadd.f32 %v497_v45, %v472_v46 }
 0x149   : > { %v499_v48 = vadd.f32 %v974_v37, %v498_v47 }
 0x14b   : > { %v500_v49 = vadd.f32 %v975_v43, %v499_v48 }
 0x14d   : > { %v501_v50 = vrot.slane %v500_v49, 4 }
 0x14f   : > { %v502_v51 = vadd.f32 %v501_v50, %v500_v49 }
 0x151   : > { %v503_v52 = vrot.slane %v502_v51, 2 }
 0x153   : > { %v504_v53 = vadd.f32 %v503_v52, %v502_v51  ;;  %v570_v52 = vlaneseq }
 0x155   : > { %v505_v54 = vrot.slane %v504_v53, 1 }
 0x157   : > { %v506_v55 = vadd.f32 %v505_v54, %v504_v53  ;;  %v571_v53 = vshrl.u32 %v570_v52, 7  ;;  %v484_v54 = vld [vmem:[%s254_s8] sm:$0x1] }
 0x159   : > { %v507_v56 = vmul.f32 0.083333336, %v506_v55  ;;  %v572_v55 = vsub.s32 0, %v571_v53 }
 0x15b   : > { %v1411_v57 = vsub.f32 %v421_v17, %v507_v56  ;;  %v1413_v58 = vsub.f32 %v424_v20, %v507_v56  ;;  %v510_v59 = vsub.f32 %v962_v16, %v507_v56  ;;  %v511_v62 = vsub.f32 %v963_v19, %v507_v56 }
 0x15c   : > { %v512_v63 = vsub.f32 %v437_v28, %v507_v56  ;;  %v513_v2 = vsub.f32 %v440_v33, %v507_v56  ;;  %v514_v5 = vsub.f32 %v966_v23, %v507_v56  ;;  %v515_v8 = vsub.f32 %v967_v31, %v507_v56 }
 0x15d   : > { %v524_v60 = vmul.f32 %v1411_v57, %v1411_v57  ;;  %v525_v61 = vmul.f32 %v1413_v58, %v1413_v58  ;;  %v526_v0 = vmul.f32 %v510_v59, %v510_v59  ;;  %v527_v3 = vmul.f32 %v511_v62, %v511_v62 }
 0x15e   : > { %v528_v6 = vmul.f32 %v512_v63, %v512_v63  ;;  %v529_v9 = vmul.f32 %v513_v2, %v513_v2  ;;  %v516_v11 = vsub.f32 %v1386_v21, %v507_v56  ;;  %v530_v12 = vmul.f32 %v514_v5, %v514_v5 }
 0x15f   : > { %v540_v1 = vadd.f32 %v525_v61, %v524_v60  ;;  %v517_v14 = vsub.f32 %v456_v34, %v507_v56  ;;  %v531_v15 = vmul.f32 %v515_v8, %v515_v8  ;;  %v518_v17 = vsub.f32 %v1384_v18, %v507_v56  ;;  %v900_v61 = vld [vmem:[%s257_s23] ss:$0 sm:$0xff] }
 0x160   : > { %v532_v19 = vmul.f32 %v516_v11, %v516_v11  ;;  %v519_v22 = vsub.f32 %v1388_v29, %v507_v56  ;;  %v520_v25 = vsub.f32 %v469_v40, %v507_v56  ;;  %v521_v28 = vsub.f32 %v472_v46, %v507_v56 }
 0x161   : > { %v541_v4 = vadd.f32 %v540_v1, %v526_v0  ;;  %v533_v24 = vmul.f32 %v517_v14, %v517_v14  ;;  %v534_v26 = vmul.f32 %v518_v17, %v518_v17  ;;  %v522_v21 = vsub.f32 %v974_v37, %v507_v56 }
 0x162   : > { %v535_v30 = vmul.f32 %v519_v22, %v519_v22  ;;  %v536_v32 = vmul.f32 %v520_v25, %v520_v25  ;;  %v523_v34 = vsub.f32 %v975_v43, %v507_v56  ;;  %v537_v35 = vmul.f32 %v521_v28, %v521_v28 }
 0x163   : > { %v542_v7 = vadd.f32 %v541_v4, %v527_v3  ;;  %v538_v38 = vmul.f32 %v522_v21, %v522_v21  ;;  %v561_v46 = vmul.f32 116.0, %v507_v56  ;;  %v631_v62 = vadd.s32 8, %v571_v53 }
 0x164   : > { %v539_v39 = vmul.f32 %v523_v34, %v523_v34 }
 0x165   : > { %v543_v10 = vadd.f32 %v542_v7, %v528_v6  ;;  %v562_v37 = vmul.f32 %v561_v46, %v507_v56  ;;  %vm647_vm0 = vcmp.lt.s32.totalorder %v631_v62, 12 }
 0x167   : > { %v544_v13 = vadd.f32 %v543_v10, %v529_v9 }
 0x169   : > { %v545_v16 = vadd.f32 %v544_v13, %v530_v12 }
 0x16b   : > { %v546_v20 = vadd.f32 %v545_v16, %v531_v15 }
 0x16d   : > { %v547_v23 = vadd.f32 %v546_v20, %v532_v19 }
 0x16f   : > { %v548_v27 = vadd.f32 %v547_v23, %v533_v24 }
 0x171   : > { %v549_v31 = vadd.f32 %v548_v27, %v534_v26 }
 0x173   : > { %v550_v33 = vadd.f32 %v549_v31, %v535_v30 }
 0x175   : > { %v551_v36 = vadd.f32 %v550_v33, %v536_v32 }
 0x177   : > { %v552_v18 = vadd.f32 %v551_v36, %v537_v35 }
 0x179   : > { %v553_v41 = vadd.f32 %v552_v18, %v538_v38 }
 0x17b   : > { %v554_v29 = vadd.f32 %v553_v41, %v539_v39 }
 0x17d   : > { %v555_v42 = vrot.slane %v554_v29, 4 }
 0x17f   : > { %v556_v40 = vadd.f32 %v555_v42, %v554_v29 }
 0x181   : > { %v557_v44 = vrot.slane %v556_v40, 2 }
 0x183   : > { %v558_v45 = vadd.f32 %v557_v44, %v556_v40 }
 0x185   : > { %v559_v47 = vrot.slane %v558_v45, 1 }
 0x187   : > { %v560_v48 = vadd.f32 %v559_v47, %v558_v45 }
 0x189   : > { %v563_v49 = vsub.f32 %v560_v48, %v562_v37 }
 0x18b   : > { %v564_v50 = vmul.f32 0.083333336, %v563_v49 }
 0x18d   : > { %v565_v43 = vmax.f32 %v564_v50, 0.0 }
 0x18f   : > { %v566_v51 = vadd.f32 1e-05, %v565_v43 }
 0x191   : > { %1072 = vrsqrt.f32 %v566_v51 }
 0x19e   : > { %v1073_v59 = vpop.eup %1072 }
 0x19f   : > { %v568_v56 = vmul.f32 %v1073_v59, %v484_v54 }
 0x1a1   : > { %v573_v60 = vrot.slane %v568_v56, %v572_v55 }
 0x1a3   : > { %v575_v63 = vmul.f32 %v573_v60, %v1411_v57  ;;  %v576_v0 = vmul.f32 %v573_v60, %v1413_v58 }
 0x1a5   : > { %v597_v1 = vadd.f32 %v900_v61, %v575_v63  ;;  %v598_v2 = vadd.f32 %v900_v61, %v576_v0 }
 0x1a7   : > { %v613_v3 = vmax.f32 %v597_v1, 0.0  ;;  %v614_v4 = vmax.f32 %v598_v2, 0.0 }
 0x1a9   : > { %v663_v5 = vsel %vm647_vm0, %v614_v4, 0.0 }
 0x1aa   : > { %v926_v57 = vpack.c.bf16 %v663_v5, %v613_v3 }
 0x1ac   : > { %927 = vst [vmem:[%s1392_s26] sm:$0xff] %v926_v57  }
 0x1ad   : > { %1141 = shalt.err (!%p1138_p5)
}
 0x1ae   : > { %s1142_s26 = scalar_lea.hbm %s1437_s5, 1024  ;;  %s1146_s8 = scalar_lea.hbm %s1487_s4, 2048 }
 0x1af   : > { %p1143_p11 = scmp.ne.s32.totalorder %s1437_s5, %s1142_s26  ;;  %p1147_p13 = scmp.lt.s32.totalorder %s1437_s5, %s1487_s4 }
 0x1b0   : > { %p1148_p4 = scmp.lt.s32.totalorder %s1146_s8, %s1142_s26 }
 0x1b1   : > { %p1144_p6 = pnand %p1143_p11, %p1503_p2 }
 0x1b2   : > { %p1149_p0 = por %p1148_p4, %p1147_p13 }
 0x1b3   : > { %p1145_p12 = pneg %p1144_p6 }
 0x1b5   : > { %p1150_p1 = pnand %p1149_p0, %p1145_p12 }
 0x1b7   : > { %1153 = shalt.err (!%p1150_p1)
}
 0x1b8   : > { %s1205_s23 = smov 64   ;;  %s1206_s7 = smov 128  }
 0x1b9   : > { %s1207_s6 = smov 4  }
 0x1ba   : > { %998 = dma.vmem_to_hbm [thread:$0]  (%p1503_p2), %s1439_s14, 1024, %s1437_s5, %s759_s13, %s1205_s23, %s1206_s7, %s1207_s6  }
 0x1bb PF: > { %s786_s11 = sand.u32 1, %s1184_s15   ;;  %p1504_p3 = scmp.ne.s32.totalorder %s1495_s28, 0 }
 0x1bc   : > { %p1505_p7 = scmp.ge.s32.totalorder %s1196_s18, 2  ;;  %s787_s20 = scalar_lea.sflag [#allocation4], %s786_s11 }
 0x1be   : > { %p1009_p8 = pnand %p1505_p7, %p1504_p3 }
 0x1c0   : > { %p1010_p9 = pneg %p1009_p8 }
 0x1c2   : > { %1179 = dma.done.wait (%p1010_p9), %s787_s20, 1024  }
 0x1c3   : > { %1181 = vsyncadd (%p1010_p9), %s787_s20, 4294966272  ;;  %p18_p10 = scmp.ge.s32.totalorder %s1258_s21, 4   ;;  %s1506_s15 = smov %s1188_s16 }
 0x1c4   : > { %s1507_s16 = smov %s1192_s17  ;;  %s1508_s17 = smov %s1270_s24 }
 0x1c5   : > { %s1509_s18 = smov %s1258_s21  ;;  %20 = sbr.rel (!%p18_p10) target bundleno = 6 (0x6), region = 92 }
 0x1ca   :  { %792 = vsyncpa [#allocation3], 1 }
 0x1cb   :  { %794 = vsyncpa [#allocation3 + $0x1], 1 }
 0x1cc   :  { %795 = vsyncpa [#allocation6], 1 }
 0x1cd   :  { %797 = vsyncpa [#allocation6 + $0x1], 1 }
 0x1ce   :  { %798 = vsyncpa [#allocation4], 1 }
 0x1cf   :  { %800 = vsyncpa [#allocation4 + $0x1], 1 }

</bundles_post_ra>
